<compile_context>
chip_gen: v6e
topology: v6e:2x2x1
jax: 0.10.0
libtpu: 0.0.40
codegen_flags: <defaults>
</compile_context>

<pallas_src>
import functools

import jax
import jax.numpy as jnp
from jax import lax
from jax.experimental import pallas as pl
from jax.experimental.pallas import tpu as pltpu


def _round_up(x, m):
    return (x + m - 1) // m * m


def _contrastive_kernel(t_row_ref, t_col_ref, v_row_ref, v_col_ref,
                        xl_ref, xr_ref, out_ref, *, margin):
    # t_row_ref: (B, 1) i32   labels for the row tile
    # t_col_ref: (1, B) i32   labels for the column tile
    # v_row_ref: (B, 1) f32   1.0 for real rows, 0.0 for padding
    # v_col_ref: (1, B) f32   1.0 for real cols, 0.0 for padding
    # xl_ref:    (B, D) f32/bf16 row tile i of x
    # xr_ref:    (B, D) f32/bf16 row tile j of x
    # out_ref:   (1, 1) f32 SMEM partial sum for row-block i (resident over j)

    # Zero the per-row-block partial at the start of the j (reduction) loop.
    @pl.when(pl.program_id(1) == 0)
    def _():
        out_ref[0, 0] = jnp.float32(0.0)

    # (B, B) similarity tile on the MXU: contract the feature axis of both
    # row-major tiles directly -- no transpose of the rhs tile.
    sim = lax.dot_general(
        xl_ref[...], xr_ref[...],
        dimension_numbers=(((1,), (1,)), ((), ())),
        preferred_element_type=jnp.float32)

    same = t_row_ref[...] == t_col_ref[...]              # (B, B) bool

    # Fused epilogue: single select tree, f32 throughout.
    contrib = jnp.where(
        same,
        jnp.where(sim < 1.0, 1.0 - sim, 0.0),            # positive pairs
        jnp.where(sim > jnp.float32(margin), sim, 0.0))  # negative pairs
    # Zero out padded rows / columns.
    contrib = contrib * v_row_ref[...] * v_col_ref[...]

    # Reduce lanes first, then sublanes; accumulate into the SMEM partial.
    partial = jnp.sum(jnp.sum(contrib, axis=1, keepdims=True))
    out_ref[0, 0] += partial


def contrastive_loss(inputs, targets, margin=0.3, *,
                     block=None, use_bf16_matmul=False,
                     vmem_limit_bytes=None):
    """Pallas implementation of ContrastiveLoss.forward.

    Args:
      inputs:  (N, D) float embeddings.
      targets: (N,)   integer labels.
      margin:  float margin for negative pairs.
      block:   sim-tile size (multiple of 128). Auto-chosen if None.
      use_bf16_matmul: cast x tiles to bf16 for the MXU (f32 accumulation).
        Changes numerics at ~1e-3 level; default False for parity.
      vmem_limit_bytes: optional scoped-VMEM override.

    Returns:
      scalar float32 loss.
    """
    n, d = inputs.shape

    # Tile size: multiple of 128 in both sim-tile dims (lane dense / MXU
    # friendly on v5e/v6e/v7x); capped at 512 so tiles fit VMEM everywhere.
    if block is None:
        block = min(512, _round_up(n, 128))
    assert block % 128 == 0, "tile size must be a multiple of 128"

    n_pad = _round_up(n, block)
    d_pad = _round_up(d, 128)

    x_dtype = jnp.bfloat16 if use_bf16_matmul else jnp.float32
    x = jnp.zeros((n_pad, d_pad), x_dtype).at[:n, :d].set(inputs.astype(x_dtype))

    t = targets.astype(jnp.int32)
    t_pad = jnp.full((n_pad,), -1, jnp.int32).at[:n].set(t)
    t_row = t_pad.reshape(n_pad, 1)
    t_col = t_pad.reshape(1, n_pad)

    valid = (jnp.arange(n_pad) < n).astype(jnp.float32)
    v_row = valid.reshape(n_pad, 1)
    v_col = valid.reshape(1, n_pad)

    grid = (n_pad // block, n_pad // block)
    num_i = grid[0]

    kernel = functools.partial(_contrastive_kernel, margin=float(margin))

    itemsize = jnp.dtype(x_dtype).itemsize
    cost = pl.CostEstimate(
        flops=2 * n_pad * n_pad * d_pad,
        transcendentals=0,
        bytes_accessed=(grid[0] + grid[0] * grid[1]) * block * d_pad * itemsize
                       + 2 * n_pad * (4 + 4) + num_i * 4,
    )

    partials = pl.pallas_call(
        kernel,
        out_shape=jax.ShapeDtypeStruct((num_i, 1), jnp.float32),
        grid_spec=pltpu.PrefetchScalarGridSpec(
            num_scalar_prefetch=0,
            grid=grid,
            in_specs=[
                pl.BlockSpec((block, 1), lambda i, j: (i, 0)),      # t_row
                pl.BlockSpec((1, block), lambda i, j: (0, j)),      # t_col
                pl.BlockSpec((block, 1), lambda i, j: (i, 0)),      # v_row
                pl.BlockSpec((1, block), lambda i, j: (0, j)),      # v_col
                pl.BlockSpec((block, d_pad), lambda i, j: (i, 0)),  # x (lhs rows)
                pl.BlockSpec((block, d_pad), lambda i, j: (j, 0)),  # x (rhs rows)
            ],
            out_specs=pl.BlockSpec((1, 1), lambda i, j: (i, 0),
                                   memory_space=pltpu.SMEM),
        ),
        compiler_params=pltpu.CompilerParams(
            dimension_semantics=("parallel", "arbitrary"),
            vmem_limit_bytes=vmem_limit_bytes,
        ),
        cost_estimate=cost,
    )(t_row, t_col, v_row, v_col, x, x)

    # TODO(synk): optional symmetry exploit (iterate j >= i, double the
    # off-diagonal tiles) would halve MXU/VPU work for very large N.
    return jnp.sum(partials) / jnp.float32(n)


def _reference_loss(inputs, targets, margin=0.3):
    # Pure-JAX reference mirroring the PyTorch loop semantics.
    sim = inputs @ inputs.T
    same = targets[:, None] == targets[None, :]
    pos = jnp.where(same & (sim < 1.0), 1.0 - sim, 0.0).sum()
    neg = jnp.where((~same) & (sim > margin), sim, 0.0).sum()
    return (pos + neg) / inputs.shape[0]


if __name__ == "__main__":
    key = jax.random.PRNGKey(0)
    k_x, k_t, k_x2, k_t2 = jax.random.split(key, 4)

    # Small shapes consistent with the module (batch of normalized embeddings).
    N, D = 8, 32
    x = jax.random.normal(k_x, (N, D), dtype=jnp.float32)
    x = x / jnp.linalg.norm(x, axis=-1, keepdims=True)
    targets = jax.random.randint(k_t, (N,), 0, 3, dtype=jnp.int32)

    loss = contrastive_loss(x, targets, margin=0.3)
    jax.block_until_ready(loss)
    ref = _reference_loss(x, targets, margin=0.3)
    assert jnp.allclose(loss, ref, atol=1e-5, rtol=1e-5), (loss, ref)

    # Second check: non-tile-aligned N/D with a multi-block grid, exercising
    # padding masks, the j-axis accumulator and the parallel i axis.
    N2, D2 = 300, 160
    x2 = jax.random.normal(k_x2, (N2, D2), dtype=jnp.float32)
    x2 = x2 / jnp.linalg.norm(x2, axis=-1, keepdims=True)
    t2 = jax.random.randint(k_t2, (N2,), 0, 16, dtype=jnp.int32)

    loss2 = contrastive_loss(x2, t2, margin=0.3, block=128)
    jax.block_until_ready(loss2)
    ref2 = _reference_loss(x2, t2, margin=0.3)
    assert jnp.allclose(loss2, ref2, atol=1e-4, rtol=1e-5), (loss2, ref2)

    print("KERNEL_OK")
</pallas_src>

<mosaic_0001>
module attributes {stable_mosaic.version = 11 : i64} {
  func.func @_contrastive_kernel(%arg0: i32, %arg1: i32, %arg2: memref<128x1xi32, #tpu.memory_space<vmem>>, %arg3: memref<1x128xi32, #tpu.memory_space<vmem>>, %arg4: memref<128x1xf32, #tpu.memory_space<vmem>>, %arg5: memref<1x128xf32, #tpu.memory_space<vmem>>, %arg6: memref<128x128xf32, #tpu.memory_space<vmem>>, %arg7: memref<128x128xf32, #tpu.memory_space<vmem>>, %arg8: memref<1x1xf32, #tpu.memory_space<smem>>) attributes {dimension_semantics = [#tpu.dimension_semantics<parallel>, #tpu.dimension_semantics<arbitrary>], iteration_bounds = array<i64: 1, 1>, scalar_prefetch = 0 : i64, scratch_operands = 0 : i64, tpu.core_type = #tpu.core_type<tc>, window_params = [{transform_indices = @transform_0, window_bounds = array<i64: 128, 1>}, {transform_indices = @transform_1, window_bounds = array<i64: 1, 128>}, {transform_indices = @transform_2, window_bounds = array<i64: 128, 1>}, {transform_indices = @transform_3, window_bounds = array<i64: 1, 128>}, {transform_indices = @transform_4, window_bounds = array<i64: 128, 128>}, {transform_indices = @transform_5, window_bounds = array<i64: 128, 128>}, {transform_indices = @transform_6, window_bounds = array<i64: 1, 1>}]} {
    %c0_i32 = arith.constant 0 : i32
    %0 = arith.cmpi eq, %arg1, %c0_i32 : i32
    %1 = arith.extui %0 : i1 to i32
    %c0_i32_0 = arith.constant 0 : i32
    %2 = arith.cmpi ne, %1, %c0_i32_0 : i32
    scf.if %2 {
      %cst_23 = arith.constant 0.000000e+00 : f32
      %c0_24 = arith.constant 0 : index
      %c0_25 = arith.constant 0 : index
      %37 = memref.load %arg8[%c0_24, %c0_25] : memref<1x1xf32, #tpu.memory_space<smem>>
      memref.store %cst_23, %arg8[%c0_24, %c0_25] : memref<1x1xf32, #tpu.memory_space<smem>>
    } else {
    }
    %c0 = arith.constant 0 : index
    %c0_1 = arith.constant 0 : index
    %3 = vector.load %arg6[%c0, %c0_1] : memref<128x128xf32, #tpu.memory_space<vmem>>, vector<128x128xf32>
    %c0_2 = arith.constant 0 : index
    %c0_3 = arith.constant 0 : index
    %4 = vector.load %arg7[%c0_2, %c0_3] : memref<128x128xf32, #tpu.memory_space<vmem>>, vector<128x128xf32>
    %cst = arith.constant dense<0.000000e+00> : vector<128x128xf32>
    %5 = tpu.matmul %3, %4, %cst {dimension_numbers = #tpu.dot_dimension_numbers<[1], [1], [0], [0], [0, 0, 1, 0], [], []>} : vector<128x128xf32>, vector<128x128xf32>, vector<128x128xf32> -> vector<128x128xf32>
    %c0_4 = arith.constant 0 : index
    %c0_5 = arith.constant 0 : index
    %6 = vector.load %arg2[%c0_4, %c0_5] : memref<128x1xi32, #tpu.memory_space<vmem>>, vector<128x1xi32>
    %c0_6 = arith.constant 0 : index
    %c0_7 = arith.constant 0 : index
    %7 = vector.load %arg3[%c0_6, %c0_7] : memref<1x128xi32, #tpu.memory_space<vmem>>, vector<1x128xi32>
    %8 = vector.broadcast %6 : vector<128x1xi32> to vector<128x128xi32>
    %9 = vector.broadcast %7 : vector<1x128xi32> to vector<128x128xi32>
    %10 = arith.cmpi eq, %8, %9 : vector<128x128xi32>
    %cst_8 = arith.constant 1.000000e+00 : f32
    %11 = vector.broadcast %cst_8 : f32 to vector<128x128xf32>
    %12 = arith.cmpf olt, %5, %11 : vector<128x128xf32>
    %cst_9 = arith.constant 1.000000e+00 : f32
    %13 = vector.broadcast %cst_9 : f32 to vector<128x128xf32>
    %14 = arith.subf %13, %5 : vector<128x128xf32>
    %cst_10 = arith.constant 0.000000e+00 : f32
    %15 = vector.broadcast %cst_10 : f32 to vector<128x128xf32>
    %16 = arith.select %12, %14, %15 : vector<128x128xi1>, vector<128x128xf32>
    %cst_11 = arith.constant 3.000000e-01 : f32
    %17 = vector.broadcast %cst_11 : f32 to vector<128x128xf32>
    %18 = arith.cmpf ogt, %5, %17 : vector<128x128xf32>
    %cst_12 = arith.constant 0.000000e+00 : f32
    %19 = vector.broadcast %cst_12 : f32 to vector<128x128xf32>
    %20 = arith.select %18, %5, %19 : vector<128x128xi1>, vector<128x128xf32>
    %21 = arith.select %10, %16, %20 : vector<128x128xi1>, vector<128x128xf32>
    %c0_13 = arith.constant 0 : index
    %c0_14 = arith.constant 0 : index
    %22 = vector.load %arg4[%c0_13, %c0_14] : memref<128x1xf32, #tpu.memory_space<vmem>>, vector<128x1xf32>
    %23 = vector.broadcast %22 : vector<128x1xf32> to vector<128x128xf32>
    %24 = arith.mulf %21, %23 : vector<128x128xf32>
    %c0_15 = arith.constant 0 : index
    %c0_16 = arith.constant 0 : index
    %25 = vector.load %arg5[%c0_15, %c0_16] : memref<1x128xf32, #tpu.memory_space<vmem>>, vector<1x128xf32>
    %26 = vector.broadcast %25 : vector<1x128xf32> to vector<128x128xf32>
    %27 = arith.mulf %24, %26 : vector<128x128xf32>
    %cst_17 = arith.constant dense<0.000000e+00> : vector<128xf32>
    %28 = vector.multi_reduction <add>, %27, %cst_17 [1] : vector<128x128xf32> to vector<128xf32>
    %29 = vector.shape_cast %28 : vector<128xf32> to vector<128x1xf32>
    %30 = vector.shape_cast %29 : vector<128x1xf32> to vector<1x128x1xf32>
    %cst_18 = arith.constant dense<0.000000e+00> : vector<1xf32>
    %31 = vector.multi_reduction <add>, %30, %cst_18 [1, 2] : vector<1x128x1xf32> to vector<1xf32>
    %32 = vector.shape_cast %31 : vector<1xf32> to vector<1x1x1xf32>
    %33 = vector.extract %32[0, 0, 0] : f32 from vector<1x1x1xf32>
    %c0_19 = arith.constant 0 : index
    %c0_20 = arith.constant 0 : index
    %34 = memref.load %arg8[%c0_19, %c0_20] : memref<1x1xf32, #tpu.memory_space<smem>>
    %35 = arith.addf %34, %33 : f32
    %c0_21 = arith.constant 0 : index
    %c0_22 = arith.constant 0 : index
    %36 = memref.load %arg8[%c0_21, %c0_22] : memref<1x1xf32, #tpu.memory_space<smem>>
    memref.store %35, %arg8[%c0_21, %c0_22] : memref<1x1xf32, #tpu.memory_space<smem>>
    return
  }
  func.func @transform_0(%arg0: i32, %arg1: i32) -> (i32, i32) {
    %c0_i32 = arith.constant 0 : i32
    %c0_i32_0 = arith.constant 0 : i32
    return %arg0, %c0_i32 : i32, i32
  }
  func.func @transform_1(%arg0: i32, %arg1: i32) -> (i32, i32) {
    %c0_i32 = arith.constant 0 : i32
    %c0_i32_0 = arith.constant 0 : i32
    return %c0_i32, %arg1 : i32, i32
  }
  func.func @transform_2(%arg0: i32, %arg1: i32) -> (i32, i32) {
    %c0_i32 = arith.constant 0 : i32
    %c0_i32_0 = arith.constant 0 : i32
    return %arg0, %c0_i32 : i32, i32
  }
  func.func @transform_3(%arg0: i32, %arg1: i32) -> (i32, i32) {
    %c0_i32 = arith.constant 0 : i32
    %c0_i32_0 = arith.constant 0 : i32
    return %c0_i32, %arg1 : i32, i32
  }
  func.func @transform_4(%arg0: i32, %arg1: i32) -> (i32, i32) {
    %c0_i32 = arith.constant 0 : i32
    %c0_i32_0 = arith.constant 0 : i32
    return %arg0, %c0_i32 : i32, i32
  }
  func.func @transform_5(%arg0: i32, %arg1: i32) -> (i32, i32) {
    %c0_i32 = arith.constant 0 : i32
    %c0_i32_0 = arith.constant 0 : i32
    return %arg1, %c0_i32 : i32, i32
  }
  func.func @transform_6(%arg0: i32, %arg1: i32) -> (i32, i32) {
    %c0_i32 = arith.constant 0 : i32
    %c0_i32_0 = arith.constant 0 : i32
    return %arg0, %c0_i32 : i32, i32
  }
}

</mosaic_0001>

<bundles_post_ra>
// kernel: tpu_custom_call.1
= control target key start
LH: loop header
LB: loop body
LE: loop exit
PB: predicated region body
PF: predicated region fallthrough
CT: control target
= control target key end

     0   :  { %v752_v3 = vmov 0   ;;  %s1231_s0 = inlined_call_operand.vmem [shape: s32[128,1], index: 0, kind: input, shape index: {}]   ;;  %s1232_s1 = inlined_call_operand.vmem [shape: s32[1,128], index: 1, kind: input, shape index: {}]   ;;  %s1233_s2 = inlined_call_operand.vmem [shape: f32[128,1], index: 2, kind: input, shape index: {}]   ;;  %s1234_s3 = inlined_call_operand.vmem [shape: f32[1,128], index: 3, kind: input, shape index: {}]   ;;  %s1235_s4 = inlined_call_operand.vmem [shape: f32[128,128], index: 4, kind: input, shape index: {}]   ;;  %s1236_s5 = inlined_call_operand.vmem [shape: f32[128,128], index: 5, kind: input, shape index: {}]   ;;  %s1237_s6 = inlined_call_operand.hbm [shape: f32[1,1], index: 6, kind: output, shape index: {}]  }
   0x1   :  { %v61_v0 = vld [vmem:[%s1236_s5 + $0x78] sm:$0xff]  ;;  %v60_v1 = vld [vmem:[%s1236_s5 + $0x70] sm:$0xff]  ;;  %v59_v2 = vld [vmem:[%s1236_s5 + $0x68] sm:$0xff]  ;;  %740 = vset.pattern.permute.xlu0 %v752_v3  ;;  %741 = vset.pattern.permute.xlu1 %v752_v3 }
   0x2   :  { %647 = vmatprep.subr.mxu0 %v61_v0  ;;  %703 = vmatprep.subr.mxu1 %v61_v0  ;;  %v207_v4 = vld [vmem:[%s1231_s0] sm:$0xff]  ;;  %v209_v5 = vld [vmem:[%s1231_s0 + $0x10] sm:$0xff]  ;;  %v208_v6 = vld [vmem:[%s1231_s0 + $0x8] sm:$0xff] }
   0x3   :  { %648 = vmatpush3.xpose.msra.mxu0 %v61_v0  ;;  %719 = vmatpush3.xpose.msra.mxu1 %v61_v0  ;;  %v388_v7 = vld [vmem:[%s1233_s2] sm:$0xff]  ;;  %v389_v11 = vld [vmem:[%s1233_s2 + $0x8] sm:$0xff]  ;;  %v210_v12 = vld [vmem:[%s1231_s0 + $0x18] sm:$0xff] }
   0x4   :  { %649 = vmatprep.subr.mxu0 %v60_v1  ;;  %704 = vmatprep.subr.mxu1 %v60_v1  ;;  %v58_v8 = vld [vmem:[%s1236_s5 + $0x60] sm:$0xff]  ;;  %v57_v13 = vld [vmem:[%s1236_s5 + $0x58] sm:$0xff]  ;;  %v390_v14 = vld [vmem:[%s1233_s2 + $0x10] sm:$0xff] }
   0x5   :  { %225 = vperm.xlu0 %740, %v207_v4   ;;  %231 = vperm.xlu1 %741, %v209_v5   ;;  %v30_v9 = vld [vmem:[%s1235_s4] sm:$0xff]  ;;  %v56_v16 = vld [vmem:[%s1236_s5 + $0x50] sm:$0xff]  ;;  %v391_v17 = vld [vmem:[%s1233_s2 + $0x18] sm:$0xff] }
   0x6   :  { %v38_v10 = vld [vmem:[%s1235_s4 + $0x40] sm:$0xff]  ;;  %679 = vmatprep.mubr.f32.mxu0 %v30_v9  ;;  %v212_v18 = vld [vmem:[%s1231_s0 + $0x28] sm:$0xff] }
   0x7   :  { %650 = vmatpush3.xpose.msra.mxu0 %v60_v1  ;;  %720 = vmatpush3.xpose.msra.mxu1 %v60_v1  ;;  %v211_v15 = vld [vmem:[%s1231_s0 + $0x20] sm:$0xff]  ;;  %v55_v19 = vld [vmem:[%s1236_s5 + $0x48] sm:$0xff] }
   0x8   :  { %651 = vmatprep.subr.mxu0 %v59_v2  ;;  %705 = vmatprep.subr.mxu1 %v59_v2 }
   0x9   :  { %228 = vperm.xlu0 %740, %v208_v6   ;;  %406 = vperm.xlu1 %741, %v388_v7  }
   0xa   :  { %691 = vmatprep.mubr.f32.mxu1 %v38_v10 }
   0xb   :  { %652 = vmatpush3.xpose.msra.mxu0 %v59_v2  ;;  %721 = vmatpush3.xpose.msra.mxu1 %v59_v2 }
   0xc   :  { %653 = vmatprep.subr.mxu0 %v58_v8  ;;  %706 = vmatprep.subr.mxu1 %v58_v8 }
   0xd   :  { %411 = vperm.xlu0 %740, %v389_v11   ;;  %234 = vperm.xlu1 %741, %v210_v12  }
   0xf   :  { %654 = vmatpush3.xpose.msra.mxu0 %v58_v8  ;;  %722 = vmatpush3.xpose.msra.mxu1 %v58_v8 }
  0x10   :  { %655 = vmatprep.subr.mxu0 %v57_v13  ;;  %707 = vmatprep.subr.mxu1 %v57_v13 }
  0x11   :  { %416 = vperm.xlu0 %740, %v390_v14   ;;  %237 = vperm.xlu1 %741, %v211_v15  }
  0x13   :  { %656 = vmatpush3.xpose.msra.mxu0 %v57_v13  ;;  %723 = vmatpush3.xpose.msra.mxu1 %v57_v13 }
  0x14   :  { %657 = vmatprep.subr.mxu0 %v56_v16  ;;  %708 = vmatprep.subr.mxu1 %v56_v16 }
  0x15   :  { %421 = vperm.xlu0 %740, %v391_v17   ;;  %240 = vperm.xlu1 %741, %v212_v18  }
  0x16   :  { %11 = vsyncpa [#allocation3], 0  ;;  %v392_v20 = vld [vmem:[%s1233_s2 + $0x20] sm:$0xff]  ;;  %v213_v21 = vld [vmem:[%s1231_s0 + $0x30] sm:$0xff] }
  0x17   :  { %658 = vmatpush3.xpose.msra.mxu0 %v56_v16  ;;  %724 = vmatpush3.xpose.msra.mxu1 %v56_v16  ;;  %v54_v22 = vld [vmem:[%s1236_s5 + $0x40] sm:$0xff]  ;;  %v393_v23 = vld [vmem:[%s1233_s2 + $0x28] sm:$0xff]  ;;  %v214_v24 = vld [vmem:[%s1231_s0 + $0x38] sm:$0xff] }
  0x18   :  { %659 = vmatprep.subr.mxu0 %v55_v19  ;;  %709 = vmatprep.subr.mxu1 %v55_v19  ;;  %v53_v25 = vld [vmem:[%s1236_s5 + $0x38] sm:$0xff]  ;;  %v394_v26 = vld [vmem:[%s1233_s2 + $0x30] sm:$0xff]  ;;  %v215_v27 = vld [vmem:[%s1231_s0 + $0x40] sm:$0xff] }
  0x19   :  { %426 = vperm.xlu0 %740, %v392_v20   ;;  %243 = vperm.xlu1 %741, %v213_v21   ;;  %v52_v28 = vld [vmem:[%s1236_s5 + $0x30] sm:$0xff]  ;;  %v395_v29 = vld [vmem:[%s1233_s2 + $0x38] sm:$0xff]  ;;  %v216_v30 = vld [vmem:[%s1231_s0 + $0x48] sm:$0xff] }
  0x1a   :  { %v51_v31 = vld [vmem:[%s1236_s5 + $0x28] sm:$0xff]  ;;  %v396_v32 = vld [vmem:[%s1233_s2 + $0x40] sm:$0xff]  ;;  %v217_v33 = vld [vmem:[%s1231_s0 + $0x50] sm:$0xff] }
  0x1b   :  { %660 = vmatpush3.xpose.msra.mxu0 %v55_v19  ;;  %725 = vmatpush3.xpose.msra.mxu1 %v55_v19  ;;  %v50_v34 = vld [vmem:[%s1236_s5 + $0x20] sm:$0xff]  ;;  %v397_v35 = vld [vmem:[%s1233_s2 + $0x48] sm:$0xff]  ;;  %v218_v36 = vld [vmem:[%s1231_s0 + $0x58] sm:$0xff] }
  0x1c   :  { %661 = vmatprep.subr.mxu0 %v54_v22  ;;  %710 = vmatprep.subr.mxu1 %v54_v22  ;;  %v49_v37 = vld [vmem:[%s1236_s5 + $0x18] sm:$0xff]  ;;  %v398_v38 = vld [vmem:[%s1233_s2 + $0x50] sm:$0xff]  ;;  %v219_v39 = vld [vmem:[%s1231_s0 + $0x60] sm:$0xff] }
  0x1d   :  { %431 = vperm.xlu0 %740, %v393_v23   ;;  %246 = vperm.xlu1 %741, %v214_v24   ;;  %v48_v40 = vld [vmem:[%s1236_s5 + $0x10] sm:$0xff]  ;;  %v399_v41 = vld [vmem:[%s1233_s2 + $0x58] sm:$0xff]  ;;  %v220_v42 = vld [vmem:[%s1231_s0 + $0x68] sm:$0xff] }
  0x1e   :  { %v47_v43 = vld [vmem:[%s1236_s5 + $0x8] sm:$0xff]  ;;  %v400_v44 = vld [vmem:[%s1233_s2 + $0x60] sm:$0xff]  ;;  %v221_v45 = vld [vmem:[%s1231_s0 + $0x70] sm:$0xff] }
  0x1f   :  { %662 = vmatpush3.xpose.msra.mxu0 %v54_v22  ;;  %726 = vmatpush3.xpose.msra.mxu1 %v54_v22  ;;  %v46_v46 = vld [vmem:[%s1236_s5] sm:$0xff]  ;;  %v401_v47 = vld [vmem:[%s1233_s2 + $0x68] sm:$0xff]  ;;  %v222_v48 = vld [vmem:[%s1231_s0 + $0x78] sm:$0xff]  ;;  %s753_s0 = smov [#allocation2]  }
  0x20   :  { %663 = vmatprep.subr.mxu0 %v53_v25  ;;  %711 = vmatprep.subr.mxu1 %v53_v25  ;;  %v31_v49 = vld [vmem:[%s1235_s4 + $0x8] sm:$0xff]  ;;  %v32_v51 = vld [vmem:[%s1235_s4 + $0x10] sm:$0xff]  ;;  %v403_v54 = vld [vmem:[%s1233_s2 + $0x78] sm:$0xff] }
  0x21   :  { %436 = vperm.xlu0 %740, %v394_v26   ;;  %249 = vperm.xlu1 %741, %v215_v27   ;;  %v39_v50 = vld [vmem:[%s1235_s4 + $0x48] sm:$0xff]  ;;  %v40_v52 = vld [vmem:[%s1235_s4 + $0x50] sm:$0xff]  ;;  %v33_v55 = vld [vmem:[%s1235_s4 + $0x18] sm:$0xff] }
  0x22   :  { %v402_v53 = vld [vmem:[%s1233_s2 + $0x70] sm:$0xff]  ;;  %v41_v56 = vld [vmem:[%s1235_s4 + $0x58] sm:$0xff]  ;;  %v34_v57 = vld [vmem:[%s1235_s4 + $0x20] sm:$0xff] }
  0x23   :  { %664 = vmatpush3.xpose.msra.mxu0 %v53_v25  ;;  %727 = vmatpush3.xpose.msra.mxu1 %v53_v25  ;;  %v42_v58 = vld [vmem:[%s1235_s4 + $0x60] sm:$0xff]  ;;  %v35_v59 = vld [vmem:[%s1235_s4 + $0x28] sm:$0xff]  ;;  %v36_v61 = vld [vmem:[%s1235_s4 + $0x30] sm:$0xff] }
  0x24   :  { %665 = vmatprep.subr.mxu0 %v52_v28  ;;  %712 = vmatprep.subr.mxu1 %v52_v28  ;;  %v43_v60 = vld [vmem:[%s1235_s4 + $0x68] sm:$0xff]  ;;  %v44_v62 = vld [vmem:[%s1235_s4 + $0x70] sm:$0xff]  ;;  %v37_v63 = vld [vmem:[%s1235_s4 + $0x38] sm:$0xff] }
  0x25   :  { %441 = vperm.xlu0 %740, %v395_v29   ;;  %252 = vperm.xlu1 %741, %v216_v30   ;;  %v45_v0 = vld [vmem:[%s1235_s4 + $0x78] sm:$0xff]  ;;  %v1026_v26 = vld [vmem:[%s1232_s1] ss:$0 sm:$0xff] }
  0x27   :  { %666 = vmatpush3.xpose.msra.mxu0 %v52_v28  ;;  %728 = vmatpush3.xpose.msra.mxu1 %v52_v28 }
  0x28   :  { %667 = vmatprep.subr.mxu0 %v51_v31  ;;  %713 = vmatprep.subr.mxu1 %v51_v31 }
  0x29   :  { %446 = vperm.xlu0 %740, %v396_v32   ;;  %255 = vperm.xlu1 %741, %v217_v33  }
  0x2b   :  { %668 = vmatpush3.xpose.msra.mxu0 %v51_v31  ;;  %729 = vmatpush3.xpose.msra.mxu1 %v51_v31 }
  0x2c   :  { %669 = vmatprep.subr.mxu0 %v50_v34  ;;  %714 = vmatprep.subr.mxu1 %v50_v34 }
  0x2d   :  { %451 = vperm.xlu0 %740, %v397_v35   ;;  %258 = vperm.xlu1 %741, %v218_v36  }
  0x2f   :  { %670 = vmatpush3.xpose.msra.mxu0 %v50_v34  ;;  %730 = vmatpush3.xpose.msra.mxu1 %v50_v34 }
  0x30   :  { %671 = vmatprep.subr.mxu0 %v49_v37  ;;  %715 = vmatprep.subr.mxu1 %v49_v37 }
  0x31   :  { %456 = vperm.xlu0 %740, %v398_v38   ;;  %261 = vperm.xlu1 %741, %v219_v39  }
  0x33   :  { %672 = vmatpush3.xpose.msra.mxu0 %v49_v37  ;;  %731 = vmatpush3.xpose.msra.mxu1 %v49_v37 }
  0x34   :  { %673 = vmatprep.subr.mxu0 %v48_v40  ;;  %716 = vmatprep.subr.mxu1 %v48_v40 }
  0x35   :  { %461 = vperm.xlu0 %740, %v399_v41   ;;  %264 = vperm.xlu1 %741, %v220_v42   ;;  %v1058_v41 = vld [vmem:[%s1234_s3] ss:$0 sm:$0xff] }
  0x37   :  { %674 = vmatpush3.xpose.msra.mxu0 %v48_v40  ;;  %732 = vmatpush3.xpose.msra.mxu1 %v48_v40 }
  0x38   :  { %675 = vmatprep.subr.mxu0 %v47_v43  ;;  %717 = vmatprep.subr.mxu1 %v47_v43 }
  0x39   :  { %466 = vperm.xlu0 %740, %v400_v44   ;;  %267 = vperm.xlu1 %741, %v221_v45  }
  0x3b   :  { %676 = vmatpush3.xpose.msra.mxu0 %v47_v43  ;;  %733 = vmatpush3.xpose.msra.mxu1 %v47_v43 }
  0x3c   :  { %677 = vmatprep.subr.mxu0 %v46_v46  ;;  %718 = vmatprep.subr.mxu1 %v46_v46 }
  0x3d   :  { %471 = vperm.xlu0 %740, %v401_v47   ;;  %270 = vperm.xlu1 %741, %v222_v48  }
  0x3f   :  { %678 = vmatpush3.xpose.msra.mxu0 %v46_v46  ;;  %734 = vmatpush3.xpose.msra.mxu1 %v46_v46 }
  0x41   :  { %476 = vperm.xlu0 %740, %v402_v53   ;;  %481 = vperm.xlu1 %741, %v403_v54  }
  0x42   :  { %680 = vmatmul.mubr.f32.vlgmr.msra.gmra.mxu0 %v31_v49  ;;  %692 = vmatmul.mubr.f32.vlgmr.msra.gmra.mxu1 %v39_v50 }
  0x43   :  { %682 = vmatprep.mubr.f32.mxu0 %v32_v51  ;;  %694 = vmatprep.mubr.f32.mxu1 %v40_v52 }
  0x46   :  { %683 = vmatmul.mubr.f32.gmra.mxu0 %v33_v55  ;;  %695 = vmatmul.mubr.f32.gmra.mxu1 %v41_v56 }
  0x47   :  { %685 = vmatprep.mubr.f32.mxu0 %v34_v57  ;;  %697 = vmatprep.mubr.f32.mxu1 %v42_v58 }
  0x4a   :  { %686 = vmatmul.mubr.f32.gmra.mxu0 %v35_v59  ;;  %698 = vmatmul.mubr.f32.gmra.mxu1 %v43_v60 }
  0x4b   :  { %688 = vmatprep.mubr.f32.mxu0 %v36_v61  ;;  %700 = vmatprep.mubr.f32.mxu1 %v44_v62 }
  0x4e   :  { %689 = vmatmul.mubr.f32.gmra.mxu0 %v37_v63  ;;  %701 = vmatmul.mubr.f32.gmra.mxu1 %v45_v0 }
  0x80   :  { %v981_v1 = vpop.permute.xlu0 %225  ;;  %v983_v3 = vpop.permute.xlu1 %231 }
  0x81   :  { %vm276_vm4 = vcmp.eq.s32.totalorder %v981_v1, %v1026_v26  ;;  %vm278_vm7 = vcmp.eq.s32.totalorder %v983_v3, %v1026_v26 }
  0x84   :  { %v229_v2 = vpop.permute.xlu0 %228  ;;  %v985_v5 = vpop.permute.xlu1 %406 }
  0x85   :  { %vm277_vm5 = vcmp.eq.s32.totalorder %v229_v2, %v1026_v26 }
  0x88   :  { %v412_v4 = vpop.permute.xlu0 %411  ;;  %v989_v7 = vpop.permute.xlu1 %234 }
  0x89   :  { %vm279_vm8 = vcmp.eq.s32.totalorder %v989_v7, %v1026_v26 }
  0x8c   :  { %v987_v6 = vpop.permute.xlu0 %416  ;;  %v993_v9 = vpop.permute.xlu1 %237 }
  0x8d   :  { %vm280_vm10 = vcmp.eq.s32.totalorder %v993_v9, %v1026_v26 }
  0x90   :  { %v991_v8 = vpop.permute.xlu0 %421  ;;  %v997_v11 = vpop.permute.xlu1 %240 }
  0x94   :  { %v995_v10 = vpop.permute.xlu0 %426  ;;  %v1001_v13 = vpop.permute.xlu1 %243 }
  0x95   :  { %vm282_vm12 = vcmp.eq.s32.totalorder %v1001_v13, %v1026_v26 }
  0x98   :  { %v999_v12 = vpop.permute.xlu0 %431  ;;  %v1005_v15 = vpop.permute.xlu1 %246 }
  0x99   :  { %vm283_vm13 = vcmp.eq.s32.totalorder %v1005_v15, %v1026_v26 }
  0x9c   :  { %v1003_v14 = vpop.permute.xlu0 %436  ;;  %v1009_v17 = vpop.permute.xlu1 %249 }
  0xa0   :  { %v1007_v16 = vpop.permute.xlu0 %441  ;;  %v1017_v23 = vpop.permute.xlu1 %252 }
  0xa4   :  { %v1013_v21 = vpop.permute.xlu0 %446  ;;  %v1038_v33 = vpop.permute.xlu1 %255 }
  0xa8   :  { %v1032_v30 = vpop.permute.xlu0 %451  ;;  %v1089_v55 = vpop.permute.xlu1 %258 }
  0xac   :  { %v1078_v50 = vpop.permute.xlu0 %456 }
 0x102   :  { %v681_v18 = vpop.f32.mrf.mxu0  ;;  %v1011_v19 = vpop.f32.mrf.mxu1 }
 0x103   :  { %vm341_vm0 = vcmp.gt.f32.partialorder %v681_v18, 0.3  ;;  %v309_v27 = vsub.f32 1.0, %v681_v18  ;;  %vm293_vm1 = vcmp.lt.f32.partialorder %v681_v18, 1.0 }
 0x104   :  { %v128_v20 = vpop.f32.mrf.mxu0  ;;  %v1015_v22 = vpop.f32.mrf.mxu1  ;;  %v357_v31 = vsel %vm341_vm0, %v681_v18, 0.0  ;;  %vm281_vm0 = vcmp.eq.s32.totalorder %v997_v11, %v1026_v26 }
 0x105   :  { %vm340_vm2 = vcmp.gt.f32.partialorder %v128_v20, 0.3  ;;  %v308_v32 = vsub.f32 1.0, %v128_v20  ;;  %vm348_vm3 = vcmp.gt.f32.partialorder %v1015_v22, 0.3  ;;  %vm292_vm6 = vcmp.lt.f32.partialorder %v128_v20, 1.0 }
 0x106   :  { %v1019_v24 = vpop.f32.mrf.mxu0  ;;  %v1028_v28 = vpop.f32.mrf.mxu1  ;;  %v356_v35 = vsel %vm340_vm2, %v128_v20, 0.0  ;;  %v325_v37 = vsel %vm293_vm1, %v309_v27, 0.0  ;;  %v316_v38 = vsub.f32 1.0, %v1015_v22  ;;  %v1052_v39 = vsel %vm348_vm3, %v1015_v22, 0.0 }
 0x107   :  { %vm343_vm9 = vcmp.gt.f32.partialorder %v1019_v24, 0.3  ;;  %v373_v40 = vsel %vm277_vm5, %v325_v37, %v357_v31  ;;  %vm295_vm14 = vcmp.lt.f32.partialorder %v1019_v24, 1.0  ;;  %v311_v43 = vsub.f32 1.0, %v1019_v24  ;;  %v1115_v27 = vpop.permute.xlu0 %461 }
 0x108   :  { %v1021_v25 = vpop.f32.mrf.mxu0  ;;  %v1045_v36 = vpop.f32.mrf.mxu1  ;;  %v485_v44 = vmul.f32 %v412_v4, %v373_v40  ;;  %v324_v45 = vsel %vm292_vm6, %v308_v32, 0.0  ;;  %v359_v46 = vsel %vm343_vm9, %v1019_v24, 0.0  ;;  %vm301_vm9 = vcmp.lt.f32.partialorder %v1011_v19, 1.0 }
 0x109   :  { %vm342_vm11 = vcmp.gt.f32.partialorder %v1021_v25, 0.3  ;;  %vm294_vm15 = vcmp.lt.f32.partialorder %v1021_v25, 1.0  ;;  %v310_v47 = vsub.f32 1.0, %v1021_v25  ;;  %v372_v48 = vsel %vm276_vm4, %v324_v45, %v356_v35  ;;  %v262_v32 = vpop.permute.xlu1 %261 }
 0x10a   :  { %v1030_v29 = vpop.f32.mrf.mxu0  ;;  %v358_v51 = vsel %vm342_vm11, %v1021_v25, 0.0  ;;  %v1083_v52 = vpop.f32.mrf.mxu1  ;;  %v508_v53 = vmul.f32 %v1058_v41, %v485_v44  ;;  %v484_v54 = vmul.f32 %v985_v5, %v372_v48  ;;  %vm302_vm11 = vcmp.lt.f32.partialorder %v1045_v36, 1.0 }
 0x10b   :  { %v313_v56 = vsub.f32 1.0, %v1030_v29  ;;  %vm345_vm3 = vcmp.gt.f32.partialorder %v1030_v29, 0.3  ;;  %v318_v60 = vsub.f32 1.0, %v1045_v36  ;;  %vm297_vm2 = vcmp.lt.f32.partialorder %v1030_v29, 1.0  ;;  %v467_v45 = vpop.permute.xlu0 %466 }
 0x10c   :  { %v148_v34 = vpop.f32.mrf.mxu0  ;;  %525 = vadd.xlane.f32.xlu1 %v508_v53  ;;  %v507_v58 = vmul.f32 %v1058_v41, %v484_v54  ;;  %v188_v62 = vpop.f32.mrf.mxu1  ;;  %v326_v1 = vsel %vm294_vm15, %v310_v47, 0.0  ;;  %v327_v2 = vsel %vm295_vm14, %v311_v43, 0.0  ;;  %v361_v4 = vsel %vm345_vm3, %v1030_v29, 0.0 }
 0x10d   :  { %vm344_vm1 = vcmp.gt.f32.partialorder %v148_v34, 0.3  ;;  %v312_v57 = vsub.f32 1.0, %v148_v34  ;;  %vm296_vm5 = vcmp.lt.f32.partialorder %v148_v34, 1.0  ;;  %v374_v5 = vsel %vm278_vm7, %v326_v1, %v358_v51 }
 0x10e   :  { %v1060_v42 = vpop.f32.mrf.mxu0  ;;  %v360_v61 = vsel %vm344_vm1, %v148_v34, 0.0  ;;  %523 = vadd.xlane.f32.xlu0 %v507_v58  ;;  %v375_v18 = vsel %vm279_vm8, %v327_v2, %v359_v46  ;;  %v486_v24 = vmul.f32 %v987_v6, %v374_v5  ;;  %v329_v3 = vsel %vm297_vm2, %v313_v56, 0.0  ;;  %v1133_v6 = vpop.f32.mrf.mxu1 }
 0x10f   :  { %v328_v20 = vsel %vm296_vm5, %v312_v57, 0.0  ;;  %v315_v25 = vsub.f32 1.0, %v1060_v42  ;;  %vm299_vm7 = vcmp.lt.f32.partialorder %v1060_v42, 1.0  ;;  %vm347_vm8 = vcmp.gt.f32.partialorder %v1060_v42, 0.3  ;;  %v472_v58 = vpop.permute.xlu0 %471 }
 0x110   :  { %v158_v49 = vpop.f32.mrf.mxu0  ;;  %v376_v31 = vsel %vm280_vm10, %v328_v20, %v360_v61  ;;  %vm285_vm14 = vcmp.eq.s32.totalorder %v1017_v23, %v1026_v26  ;;  %vm350_vm15 = vcmp.gt.f32.partialorder %v1045_v36, 0.3  ;;  %v509_v9 = vmul.f32 %v1058_v41, %v486_v24  ;;  %v198_v46 = vpop.f32.mrf.mxu1 }
 0x111   :  { %vm298_vm4 = vcmp.lt.f32.partialorder %v158_v49, 1.0  ;;  %v314_v59 = vsub.f32 1.0, %v158_v49  ;;  %vm346_vm6 = vcmp.gt.f32.partialorder %v158_v49, 0.3  ;;  %v488_v7 = vmul.f32 %v995_v10, %v376_v31 }
 0x112   :  { %v362_v0 = vsel %vm346_vm6, %v158_v49, 0.0  ;;  %v487_v29 = vmul.f32 %v991_v8, %v375_v18  ;;  %v317_v37 = vsub.f32 1.0, %v1011_v19  ;;  %v377_v13 = vsel %vm281_vm0, %v329_v3, %v361_v4  ;;  %527 = vadd.xlane.f32.xlu0 %v509_v9 }
 0x113   :  { %v330_v63 = vsel %vm298_vm4, %v314_v59, 0.0  ;;  %v511_v10 = vmul.f32 %v1058_v41, %v488_v7  ;;  %vm1238_vm10 = vcmp.lt.f32.partialorder %v1015_v22, 1.0  ;;  %v363_v43 = vsel %vm347_vm8, %v1060_v42, 0.0 }
 0x114   :  { %v378_v34 = vsel %vm282_vm12, %v330_v63, %v362_v0  ;;  %v332_v40 = vsel %vm1238_vm10, %v316_v38, 0.0  ;;  %vm349_vm12 = vcmp.gt.f32.partialorder %v1011_v19, 0.3  ;;  %v331_v8 = vsel %vm299_vm7, %v315_v25, 0.0 }
 0x115   :  { %v490_v35 = vmul.f32 %v1003_v14, %v378_v34  ;;  %vm1239_vm1 = vcmp.eq.s32.totalorder %v1009_v17, %v1026_v26  ;;  %v366_v11 = vsel %vm350_vm15, %v1045_v36, 0.0  ;;  %v320_v44 = vsub.f32 1.0, %v188_v62  ;;  %531 = vadd.xlane.f32.xlu1 %v511_v10  ;;  %v265_v17 = vpop.permute.xlu1 %264 }
 0x116   :  { %v380_v14 = vsel %vm1239_vm1, %v332_v40, %v1052_v39  ;;  %v334_v38 = vsel %vm302_vm11, %v318_v60, 0.0  ;;  %vm304_vm0 = vcmp.lt.f32.partialorder %v188_v62, 1.0  ;;  %vm352_vm2 = vcmp.gt.f32.partialorder %v188_v62, 0.3 }
 0x117   :  { %v513_v22 = vmul.f32 %v1058_v41, %v490_v35  ;;  %v510_v42 = vmul.f32 %v1058_v41, %v487_v29  ;;  %v489_v47 = vmul.f32 %v999_v12, %v377_v13  ;;  %vm286_vm3 = vcmp.eq.s32.totalorder %v1038_v33, %v1026_v26 }
 0x118   :  { %v365_v39 = vsel %vm349_vm12, %v1011_v19, 0.0  ;;  %v379_v36 = vsel %vm283_vm13, %v331_v8, %v363_v43  ;;  %v492_v48 = vmul.f32 %v1013_v21, %v380_v14  ;;  %vm303_vm4 = vcmp.lt.f32.partialorder %v1028_v28, 1.0 }
 0x119   :  { %v319_v49 = vsub.f32 1.0, %v1028_v28  ;;  %529 = vadd.xlane.f32.xlu0 %v510_v42  ;;  %v333_v12 = vsel %vm301_vm9, %v317_v37, 0.0  ;;  %v382_v33 = vsel %vm286_vm3, %v334_v38, %v366_v11  ;;  %vm351_vm5 = vcmp.gt.f32.partialorder %v1028_v28, 0.3  ;;  %535 = vadd.xlane.f32.xlu1 %v513_v22 }
 0x11a   :  { %v368_v51 = vsel %vm352_vm2, %v188_v62, 0.0  ;;  %v322_v53 = vsub.f32 1.0, %v198_v46  ;;  %v336_v54 = vsel %vm304_vm0, %v320_v44, 0.0  ;;  %vm306_vm6 = vcmp.lt.f32.partialorder %v198_v46, 1.0  ;;  %v268_v62 = vpop.permute.xlu1 %267 }
 0x11b   :  { %vm354_vm13 = vcmp.gt.f32.partialorder %v198_v46, 0.3  ;;  %v512_v15 = vmul.f32 %v1058_v41, %v489_v47  ;;  %v491_v21 = vmul.f32 %v1007_v16, %v379_v36  ;;  %vm288_vm11 = vcmp.eq.s32.totalorder %v262_v32, %v1026_v26 }
 0x11c   :  { %v515_v56 = vmul.f32 %v1058_v41, %v492_v48  ;;  %v381_v19 = vsel %vm285_vm14, %v333_v12, %v365_v39  ;;  %v494_v57 = vmul.f32 %v1078_v50, %v382_v33  ;;  %v367_v59 = vsel %vm351_vm5, %v1028_v28, 0.0 }
 0x11d   :  { %v321_v60 = vsub.f32 1.0, %v1083_v52  ;;  %533 = vadd.xlane.f32.xlu0 %v512_v15  ;;  %v335_v61 = vsel %vm303_vm4, %v319_v49, 0.0  ;;  %v384_v16 = vsel %vm288_vm11, %v336_v54, %v368_v51  ;;  %vm305_vm9 = vcmp.lt.f32.partialorder %v1083_v52, 1.0 }
 0x11e   :  { %vm353_vm7 = vcmp.gt.f32.partialorder %v1083_v52, 0.3  ;;  %v338_v23 = vsel %vm306_vm6, %v322_v53, 0.0  ;;  %v370_v63 = vsel %vm354_vm13, %v198_v46, 0.0  ;;  %539 = vadd.xlane.f32.xlu1 %v515_v56  ;;  %vm287_vm8 = vcmp.eq.s32.totalorder %v1089_v55, %v1026_v26  ;;  %v271_v24 = vpop.permute.xlu1 %270 }
 0x11f   :  { %v514_v50 = vmul.f32 %v1058_v41, %v491_v21  ;;  %v493_v0 = vmul.f32 %v1032_v30, %v381_v19  ;;  %vm290_vm14 = vcmp.eq.s32.totalorder %v268_v62, %v1026_v26  ;;  %v517_v28 = vmul.f32 %v1058_v41, %v494_v57  ;;  %v477_v30 = vpop.permute.xlu0 %476 }
 0x120   :  { %v383_v1 = vsel %vm287_vm8, %v335_v61, %v367_v59  ;;  %v496_v2 = vmul.f32 %v467_v45, %v384_v16  ;;  %v369_v4 = vsel %vm353_vm7, %v1083_v52, 0.0  ;;  %v323_v5 = vsub.f32 1.0, %v1133_v6 }
 0x121   :  { %537 = vadd.xlane.f32.xlu0 %v514_v50  ;;  %v337_v18 = vsel %vm305_vm9, %v321_v60, 0.0  ;;  %v386_v20 = vsel %vm290_vm14, %v338_v23, %v370_v63  ;;  %vm307_vm15 = vcmp.lt.f32.partialorder %v1133_v6, 1.0  ;;  %vm355_vm10 = vcmp.gt.f32.partialorder %v1133_v6, 0.3 }
 0x122   :  { %543 = vadd.xlane.f32.xlu1 %v517_v28  ;;  %vm289_vm12 = vcmp.eq.s32.totalorder %v265_v17, %v1026_v26  ;;  %v516_v55 = vmul.f32 %v1058_v41, %v493_v0  ;;  %v495_v25 = vmul.f32 %v1115_v27, %v383_v1  ;;  %v519_v52 = vmul.f32 %v1058_v41, %v496_v2  ;;  %v482_v27 = vpop.permute.xlu1 %481 }
 0x123   :  { %v385_v31 = vsel %vm289_vm12, %v337_v18, %v369_v4  ;;  %v498_v3 = vmul.f32 %v477_v30, %v386_v20  ;;  %v371_v32 = vsel %vm355_vm10, %v1133_v6, 0.0  ;;  %v339_v7 = vsel %vm307_vm15, %v323_v5, 0.0 }
 0x124   :  { %vm291_vm1 = vcmp.eq.s32.totalorder %v271_v24, %v1026_v26  ;;  %v518_v34 = vmul.f32 %v1058_v41, %v495_v25  ;;  %v497_v9 = vmul.f32 %v472_v58, %v385_v31  ;;  %vm555_vm0 = vcmask 7168  }
 0x125   :  { %541 = vadd.xlane.f32.xlu0 %v516_v55  ;;  %v521_v29 = vmul.f32 %v1058_v41, %v498_v3  ;;  %v387_v35 = vsel %vm291_vm1, %v339_v7, %v371_v32 }
 0x126   :  { %547 = vadd.xlane.f32.xlu1 %v519_v52  ;;  %v520_v37 = vmul.f32 %v1058_v41, %v497_v9  ;;  %v499_v10 = vmul.f32 %v482_v27, %v387_v35 }
 0x128   :  { %v522_v6 = vmul.f32 %v1058_v41, %v499_v10 }
 0x129   :  { %545 = vadd.xlane.f32.xlu0 %v518_v34 }
 0x12a   :  { %551 = vadd.xlane.f32.xlu1 %v521_v29 }
 0x12d   :  { %549 = vadd.xlane.f32.xlu0 %v520_v37 }
 0x131   :  { %553 = vadd.xlane.f32.xlu0 %v522_v6 }
 0x195   :  { %v526_v40 = vpop.xlane.xlu1 %525 }
 0x196   :  { %v557_v8 = vsel %vm555_vm0, %v526_v40, 0.0 }
 0x197   :  { %v524_v13 = vpop.xlane.xlu0 %523 }
 0x198   :  { %v556_v26 = vsel %vm555_vm0, %v524_v13, 0.0 }
 0x199   :  { %v558_v44 = vadd.f32 %v557_v8, %v556_v26 }
 0x19b   :  { %v528_v43 = vpop.xlane.xlu0 %527 }
 0x19c   :  { %v559_v14 = vsel %vm555_vm0, %v528_v43, 0.0 }
 0x19d   :  { %v560_v22 = vadd.f32 %v559_v14, %v558_v44 }
 0x19e   :  { %v532_v11 = vpop.xlane.xlu1 %531 }
 0x19f   :  { %v563_v41 = vsel %vm555_vm0, %v532_v11, 0.0 }
 0x1a2   :  { %v530_v38 = vpop.xlane.xlu0 %529  ;;  %v536_v46 = vpop.xlane.xlu1 %535 }
 0x1a3   :  { %v561_v45 = vsel %vm555_vm0, %v530_v38, 0.0  ;;  %v567_v49 = vsel %vm555_vm0, %v536_v46, 0.0 }
 0x1a4   :  { %v562_v42 = vadd.f32 %v561_v45, %v560_v22 }
 0x1a6   :  { %v564_v47 = vadd.f32 %v563_v41, %v562_v42  ;;  %v534_v17 = vpop.xlane.xlu0 %533 }
 0x1a7   :  { %v565_v39 = vsel %vm555_vm0, %v534_v17, 0.0  ;;  %v540_v36 = vpop.xlane.xlu1 %539 }
 0x1a8   :  { %v566_v48 = vadd.f32 %v565_v39, %v564_v47  ;;  %v571_v15 = vsel %vm555_vm0, %v540_v36, 0.0 }
 0x1aa   :  { %v568_v12 = vadd.f32 %v567_v49, %v566_v48  ;;  %v538_v33 = vpop.xlane.xlu0 %537 }
 0x1ab   :  { %v569_v51 = vsel %vm555_vm0, %v538_v33, 0.0  ;;  %v544_v53 = vpop.xlane.xlu1 %543 }
 0x1ac   :  { %v570_v54 = vadd.f32 %v569_v51, %v568_v12  ;;  %v575_v59 = vsel %vm555_vm0, %v544_v53, 0.0 }
 0x1ae   :  { %v572_v21 = vadd.f32 %v571_v15, %v570_v54  ;;  %v542_v56 = vpop.xlane.xlu0 %541 }
 0x1af   :  { %v573_v19 = vsel %vm555_vm0, %v542_v56, 0.0  ;;  %v548_v58 = vpop.xlane.xlu1 %547 }
 0x1b0   :  { %v574_v57 = vadd.f32 %v573_v19, %v572_v21  ;;  %v579_v23 = vsel %vm555_vm0, %v548_v58, 0.0 }
 0x1b2   :  { %v576_v60 = vadd.f32 %v575_v59, %v574_v57  ;;  %v546_v61 = vpop.xlane.xlu0 %545 }
 0x1b3   :  { %v577_v16 = vsel %vm555_vm0, %v546_v61, 0.0  ;;  %v552_v0 = vpop.xlane.xlu1 %551 }
 0x1b4   :  { %v578_v62 = vadd.f32 %v577_v16, %v576_v60  ;;  %v583_v2 = vsel %vm555_vm0, %v552_v0, 0.0 }
 0x1b6   :  { %v580_v63 = vadd.f32 %v579_v23, %v578_v62  ;;  %v550_v50 = vpop.xlane.xlu0 %549 }
 0x1b7   :  { %v581_v28 = vsel %vm555_vm0, %v550_v50, 0.0 }
 0x1b8   :  { %v582_v1 = vadd.f32 %v581_v28, %v580_v63 }
 0x1ba   :  { %v584_v4 = vadd.f32 %v583_v2, %v582_v1  ;;  %v554_v5 = vpop.xlane.xlu0 %553 }
 0x1bb   :  { %v585_v18 = vsel %vm555_vm0, %v554_v5, 0.0 }
 0x1bc   :  { %v586_v20 = vadd.f32 %v585_v18, %v584_v4 }
 0x1be   :  { %587 = vadd.xlane.f32.xlu1 %v586_v20 }
 0x247   :  { %v588_v30 = vpop.xlane.xlu1 %587 }
 0x248   :  { %v589_v55 = vrot.slane %v588_v30, 4 }
 0x24a   :  { %v590_v25 = vadd.f32 %v589_v55, %v588_v30 }
 0x24c   :  { %v591_v24 = vrot.slane %v590_v25, 2 }
 0x24e   :  { %v592_v52 = vadd.f32 %v591_v24, %v590_v25 }
 0x250   :  { %v593_v31 = vrot.slane %v592_v52, 1 }
 0x252   :  { %v594_v3 = vadd.f32 %v593_v31, %v592_v52 }
 0x254   :  { %735 = vpush %v594_v3 }
 0x285   :  { %s736_s3 = spop %735 }
 0x286   :  { %599 = sst [smem:[#allocation2]] %s736_s3 }
 0x287   :  { %607 = dma.smem_to_hbm %s753_s0, 16, %s1237_s6, [#allocation3]  }
 0x288   :  { %750 = dma.done.wait [#allocation3], 16  }
 0x289   :  { %751 = vsyncadd [#allocation3], 4294967280 }
 0x28a   :  { %611 = sfence }
 0x28b   :  { %612 = vsyncpa [#allocation3], 1 }

</bundles_post_ra>
